<compile_context>
chip_gen: v5e
topology: v5e:2x2
jax: 0.10.0
libtpu: 0.0.40
codegen_flags: <defaults>
</compile_context>

<pallas_src>
import functools

import jax
import jax.numpy as jnp
from jax.experimental import pallas as pl
from jax.experimental.pallas import tpu as pltpu


# ----------------------------------------------------------------------------
# Helpers
# ----------------------------------------------------------------------------
def _round_up(x, m):
    return (x + m - 1) // m * m


def _pick_tile_b(b, f0p, padded_fouts, num_hidden, requested_tb, weight_bytes):
    """Largest batch tile (multiple of 8) whose double-buffered input/output
    tiles plus the resident weights stay inside a conservative VMEM budget."""
    out_width = sum(2 * padded_fouts[i] for i in range(num_hidden))
    out_width += padded_fouts[-1]
    per_row_bytes = (f0p + out_width) * 4          # f32 in + all f32 outs
    budget = 24 * 1024 * 1024 - weight_bytes       # conservative for v7x
    budget = max(budget, 1 << 20)
    max_tb = budget // (2 * per_row_bytes)         # x2: double buffering
    max_tb = max(8, (max_tb // 8) * 8)
    tb = min(requested_tb, max_tb, _round_up(b, 8))
    return max(8, (tb // 8) * 8)


# ----------------------------------------------------------------------------
# Fused kernel: all layers of the MLP in one kernel body
# ----------------------------------------------------------------------------
def _make_mlp_kernel(num_hidden):
    """Kernel refs: x, w_0..w_H (H = num_hidden, w_H is the output layer),
    then outputs z_0, h_0, z_1, h_1, ..., logits."""

    def kernel(*refs):
        x_ref = refs[0]
        w_refs = refs[1:num_hidden + 2]
        out_refs = refs[num_hidden + 2:]

        h = x_ref[...]
        for i in range(num_hidden):  # static unroll over layers
            z = jnp.dot(h, w_refs[i][...], preferred_element_type=jnp.float32)
            out_refs[2 * i][...] = z.astype(out_refs[2 * i].dtype)
            h = jnp.maximum(z, 0.0)
            out_refs[2 * i + 1][...] = h.astype(out_refs[2 * i + 1].dtype)
        logits = jnp.dot(h, w_refs[num_hidden][...],
                         preferred_element_type=jnp.float32)
        out_refs[-1][...] = logits.astype(out_refs[-1].dtype)

    return kernel


# ----------------------------------------------------------------------------
# One-time weight preparation: transpose + zero-pad to lane-dense shapes
# ----------------------------------------------------------------------------
def prepare_weights(hidden_weights, output_weight):
    """PyTorch-layout (Fout, Fin) weights -> (Fin_pad, Fout_pad) with both dims
    zero-padded up to multiples of 128.  Done once, outside the forward path."""
    padded = []
    for w in list(hidden_weights) + [output_weight]:
        fout, fin = w.shape
        wt = w.T  # (Fin, Fout)
        finp = _round_up(fin, 128)
        foutp = _round_up(fout, 128)
        wt = jnp.pad(wt, ((0, finp - fin), (0, foutp - fout)))
        padded.append(wt.astype(jnp.float32))
    return tuple(padded)


# ----------------------------------------------------------------------------
# Fused forward (single pallas_call, single jit)
# ----------------------------------------------------------------------------
@functools.partial(jax.jit, static_argnames=("feature_dims", "tile_b"))
def _mlp_forward_impl(x, padded_wts, feature_dims, tile_b):
    num_hidden = len(padded_wts) - 1
    b = x.shape[0]
    x2 = x.reshape(b, -1)  # x.view(x.size(0), -1)
    f0 = feature_dims[0]
    f0p = padded_wts[0].shape[0]
    padded_fouts = [w.shape[1] for w in padded_wts]
    weight_bytes = sum(w.shape[0] * w.shape[1] * 4 for w in padded_wts)

    # Batch tile: multiple of 8 (sublane), VMEM-budgeted, capped at `tile_b`.
    tb = _pick_tile_b(b, f0p, padded_fouts, num_hidden, tile_b, weight_bytes)
    bp = _round_up(b, tb)

    x_pad = x2
    if bp != b or f0p != f0:
        x_pad = jnp.pad(x2, ((0, bp - b), (0, f0p - f0)))

    grid = (bp // tb,)

    in_specs = [pl.BlockSpec((tb, f0p), lambda i: (i, 0))]
    for w in padded_wts:  # weights resident: same (0,0) block every step
        in_specs.append(pl.BlockSpec(w.shape, lambda i: (0, 0)))

    out_shapes = []
    out_specs = []
    for li in range(num_hidden):
        fp = padded_fouts[li]
        out_shapes += [jax.ShapeDtypeStruct((bp, fp), jnp.float32)] * 2  # Z, H
        out_specs += [pl.BlockSpec((tb, fp), lambda i: (i, 0))] * 2
    flp = padded_fouts[-1]
    out_shapes.append(jax.ShapeDtypeStruct((bp, flp), jnp.float32))      # logits
    out_specs.append(pl.BlockSpec((tb, flp), lambda i: (i, 0)))

    # Advisory cost hint for the XLA scheduler.
    true_flops = 0
    prev = f0
    for fi in feature_dims[1:]:
        true_flops += 2 * b * prev * fi
        prev = fi
    bytes_accessed = (x_pad.size + weight_bytes // 4
                      + sum(s.size for s in out_shapes)) * 4

    outs = pl.pallas_call(
        _make_mlp_kernel(num_hidden),
        out_shape=tuple(out_shapes),
        grid=grid,
        in_specs=in_specs,
        out_specs=tuple(out_specs),
        compiler_params=pltpu.CompilerParams(
            dimension_semantics=("parallel",)),
        cost_estimate=pl.CostEstimate(flops=true_flops, transcendentals=0,
                                      bytes_accessed=bytes_accessed),
    )(x_pad, *padded_wts)

    # Slice padded outputs back to true extents (static slices; no-op when
    # shapes already match).
    def _slice(a, rows, cols):
        if a.shape == (rows, cols):
            return a
        return a[:rows, :cols]

    activations = [x2]
    preactivations = []
    for li in range(num_hidden):
        fi = feature_dims[li + 1]
        preactivations.append(_slice(outs[2 * li], b, fi))
        activations.append(_slice(outs[2 * li + 1], b, fi))
    logits = _slice(outs[-1], b, feature_dims[-1])
    # TODO(synk): retain_grad / requires_grad_ are autograd bookkeeping with no
    # forward-pass compute; nothing to translate for a forward kernel.
    preactivations.append(logits)
    return logits, activations, preactivations


def mlp_forward(x, padded_wts, feature_dims, *, tile_b=512):
    """
    Args:
      x:            input of shape (B, ...) -> flattened to (B, prod(...))
      padded_wts:   tuple from prepare_weights() (pre-transposed, pre-padded)
      feature_dims: true (unpadded) architecture, e.g. (64, 32, 32, 16)
    Returns:
      (logits, activations, preactivations) matching the PyTorch module.
    """
    return _mlp_forward_impl(x, padded_wts, tuple(int(d) for d in feature_dims),
                             int(tile_b))


# ----------------------------------------------------------------------------
# Parameter init (deterministic; matches nn.Linear(bias=False) shapes/layout)
# ----------------------------------------------------------------------------
def init_params(architecture, key):
    """architecture: e.g. [64, 32, 32, 16]."""
    hidden_weights = []
    n_hidden = len(architecture) - 2
    keys = jax.random.split(key, n_hidden + 1)
    for i in range(1, len(architecture) - 1):
        fan_in = architecture[i - 1]
        bound = 1.0 / jnp.sqrt(fan_in)
        w = jax.random.uniform(
            keys[i - 1], (architecture[i], architecture[i - 1]),
            minval=-bound, maxval=bound, dtype=jnp.float32)
        hidden_weights.append(w)
    fan_in = architecture[-2]
    bound = 1.0 / jnp.sqrt(fan_in)
    output_weight = jax.random.uniform(
        keys[-1], (architecture[-1], architecture[-2]),
        minval=-bound, maxval=bound, dtype=jnp.float32)
    return hidden_weights, output_weight


# ----------------------------------------------------------------------------
# Main
# ----------------------------------------------------------------------------
if __name__ == "__main__":
    key = jax.random.PRNGKey(0)
    k_x, k_w = jax.random.split(key)

    # Small shapes: batch=32, input flattens 4*4*4 -> 64, hidden 32, 32, out 16.
    architecture = [64, 32, 32, 16]
    x = jax.random.normal(k_x, (32, 4, 4, 4), dtype=jnp.float32)

    hidden_weights, output_weight = init_params(architecture, k_w)
    padded_wts = prepare_weights(hidden_weights, output_weight)  # once

    logits, activations, preactivations = mlp_forward(
        x, padded_wts, architecture)

    jax.block_until_ready(logits)
    jax.block_until_ready(activations)
    jax.block_until_ready(preactivations)

    # Cross-check against a plain-JAX reference of the same forward pass.
    xr = x.reshape(x.shape[0], -1)
    ref_acts = [xr]
    ref_pres = []
    h = xr
    for w in hidden_weights:
        z = h @ w.T
        h = jnp.maximum(z, 0.0)
        ref_pres.append(z)
        ref_acts.append(h)
    ref_logits = h @ output_weight.T
    ref_pres.append(ref_logits)

    assert logits.shape == (x.shape[0], architecture[-1])
    assert len(activations) == len(architecture) - 1       # input + hiddens
    assert len(preactivations) == len(architecture) - 1    # hidden Zs + logits
    assert jnp.allclose(logits, ref_logits, atol=1e-5, rtol=1e-5)
    for a, ra in zip(activations, ref_acts):
        assert a.shape == ra.shape
        assert jnp.allclose(a, ra, atol=1e-5, rtol=1e-5)
    for p, rp in zip(preactivations, ref_pres):
        assert p.shape == rp.shape
        assert jnp.allclose(p, rp, atol=1e-5, rtol=1e-5)

    print("KERNEL_OK")
</pallas_src>

<mosaic_0001>
module attributes {stable_mosaic.version = 11 : i64} {
  func.func @kernel(%arg0: i32, %arg1: memref<32x128xf32, #tpu.memory_space<vmem>>, %arg2: memref<128x128xf32, #tpu.memory_space<vmem>>, %arg3: memref<128x128xf32, #tpu.memory_space<vmem>>, %arg4: memref<128x128xf32, #tpu.memory_space<vmem>>, %arg5: memref<32x128xf32, #tpu.memory_space<vmem>>, %arg6: memref<32x128xf32, #tpu.memory_space<vmem>>, %arg7: memref<32x128xf32, #tpu.memory_space<vmem>>, %arg8: memref<32x128xf32, #tpu.memory_space<vmem>>, %arg9: memref<32x128xf32, #tpu.memory_space<vmem>>) attributes {dimension_semantics = [#tpu.dimension_semantics<parallel>], iteration_bounds = array<i64: 1>, scalar_prefetch = 0 : i64, scratch_operands = 0 : i64, tpu.core_type = #tpu.core_type<tc>, window_params = [{transform_indices = @transform_0, window_bounds = array<i64: 32, 128>}, {pipeline_mode = #tpu.pipeline_mode<synchronous>, transform_indices = @transform_1, window_bounds = array<i64: 128, 128>}, {pipeline_mode = #tpu.pipeline_mode<synchronous>, transform_indices = @transform_2, window_bounds = array<i64: 128, 128>}, {pipeline_mode = #tpu.pipeline_mode<synchronous>, transform_indices = @transform_3, window_bounds = array<i64: 128, 128>}, {transform_indices = @transform_4, window_bounds = array<i64: 32, 128>}, {transform_indices = @transform_5, window_bounds = array<i64: 32, 128>}, {transform_indices = @transform_6, window_bounds = array<i64: 32, 128>}, {transform_indices = @transform_7, window_bounds = array<i64: 32, 128>}, {transform_indices = @transform_8, window_bounds = array<i64: 32, 128>}]} {
    %c0 = arith.constant 0 : index
    %c0_0 = arith.constant 0 : index
    %0 = vector.load %arg1[%c0, %c0_0] : memref<32x128xf32, #tpu.memory_space<vmem>>, vector<32x128xf32>
    %c0_1 = arith.constant 0 : index
    %c0_2 = arith.constant 0 : index
    %1 = vector.load %arg2[%c0_1, %c0_2] : memref<128x128xf32, #tpu.memory_space<vmem>>, vector<128x128xf32>
    %cst = arith.constant dense<0.000000e+00> : vector<32x128xf32>
    %2 = tpu.matmul %0, %1, %cst {dimension_numbers = #tpu.dot_dimension_numbers<[1], [0], [0], [1], [0, 0, 1, 1], [], []>} : vector<32x128xf32>, vector<128x128xf32>, vector<32x128xf32> -> vector<32x128xf32>
    %c0_3 = arith.constant 0 : index
    %c0_4 = arith.constant 0 : index
    %3 = vector.load %arg5[%c0_3, %c0_4] : memref<32x128xf32, #tpu.memory_space<vmem>>, vector<32x128xf32>
    tpu.vector_store %arg5[%c0_3, %c0_4], %2 {strides = array<i32>} : memref<32x128xf32, #tpu.memory_space<vmem>>, vector<32x128xf32>,
    %cst_5 = arith.constant 0.000000e+00 : f32
    %4 = vector.broadcast %cst_5 : f32 to vector<32x128xf32>
    %5 = arith.maximumf %2, %4 : vector<32x128xf32>
    %c0_6 = arith.constant 0 : index
    %c0_7 = arith.constant 0 : index
    %6 = vector.load %arg6[%c0_6, %c0_7] : memref<32x128xf32, #tpu.memory_space<vmem>>, vector<32x128xf32>
    tpu.vector_store %arg6[%c0_6, %c0_7], %5 {strides = array<i32>} : memref<32x128xf32, #tpu.memory_space<vmem>>, vector<32x128xf32>,
    %c0_8 = arith.constant 0 : index
    %c0_9 = arith.constant 0 : index
    %7 = vector.load %arg3[%c0_8, %c0_9] : memref<128x128xf32, #tpu.memory_space<vmem>>, vector<128x128xf32>
    %cst_10 = arith.constant dense<0.000000e+00> : vector<32x128xf32>
    %8 = tpu.matmul %5, %7, %cst_10 {dimension_numbers = #tpu.dot_dimension_numbers<[1], [0], [0], [1], [0, 0, 1, 1], [], []>} : vector<32x128xf32>, vector<128x128xf32>, vector<32x128xf32> -> vector<32x128xf32>
    %c0_11 = arith.constant 0 : index
    %c0_12 = arith.constant 0 : index
    %9 = vector.load %arg7[%c0_11, %c0_12] : memref<32x128xf32, #tpu.memory_space<vmem>>, vector<32x128xf32>
    tpu.vector_store %arg7[%c0_11, %c0_12], %8 {strides = array<i32>} : memref<32x128xf32, #tpu.memory_space<vmem>>, vector<32x128xf32>,
    %cst_13 = arith.constant 0.000000e+00 : f32
    %10 = vector.broadcast %cst_13 : f32 to vector<32x128xf32>
    %11 = arith.maximumf %8, %10 : vector<32x128xf32>
    %c0_14 = arith.constant 0 : index
    %c0_15 = arith.constant 0 : index
    %12 = vector.load %arg8[%c0_14, %c0_15] : memref<32x128xf32, #tpu.memory_space<vmem>>, vector<32x128xf32>
    tpu.vector_store %arg8[%c0_14, %c0_15], %11 {strides = array<i32>} : memref<32x128xf32, #tpu.memory_space<vmem>>, vector<32x128xf32>,
    %c0_16 = arith.constant 0 : index
    %c0_17 = arith.constant 0 : index
    %13 = vector.load %arg4[%c0_16, %c0_17] : memref<128x128xf32, #tpu.memory_space<vmem>>, vector<128x128xf32>
    %cst_18 = arith.constant dense<0.000000e+00> : vector<32x128xf32>
    %14 = tpu.matmul %11, %13, %cst_18 {dimension_numbers = #tpu.dot_dimension_numbers<[1], [0], [0], [1], [0, 0, 1, 1], [], []>} : vector<32x128xf32>, vector<128x128xf32>, vector<32x128xf32> -> vector<32x128xf32>
    %c0_19 = arith.constant 0 : index
    %c0_20 = arith.constant 0 : index
    %15 = vector.load %arg9[%c0_19, %c0_20] : memref<32x128xf32, #tpu.memory_space<vmem>>, vector<32x128xf32>
    tpu.vector_store %arg9[%c0_19, %c0_20], %14 {strides = array<i32>} : memref<32x128xf32, #tpu.memory_space<vmem>>, vector<32x128xf32>,
    return
  }
  func.func @transform_0(%arg0: i32) -> (i32, i32) {
    %c0_i32 = arith.constant 0 : i32
    %c0_i32_0 = arith.constant 0 : i32
    return %arg0, %c0_i32 : i32, i32
  }
  func.func @transform_1(%arg0: i32) -> (i32, i32) {
    %c0_i32 = arith.constant 0 : i32
    %c0_i32_0 = arith.constant 0 : i32
    %c0_i32_1 = arith.constant 0 : i32
    return %c0_i32, %c0_i32_0 : i32, i32
  }
  func.func @transform_2(%arg0: i32) -> (i32, i32) {
    %c0_i32 = arith.constant 0 : i32
    %c0_i32_0 = arith.constant 0 : i32
    %c0_i32_1 = arith.constant 0 : i32
    return %c0_i32, %c0_i32_0 : i32, i32
  }
  func.func @transform_3(%arg0: i32) -> (i32, i32) {
    %c0_i32 = arith.constant 0 : i32
    %c0_i32_0 = arith.constant 0 : i32
    %c0_i32_1 = arith.constant 0 : i32
    return %c0_i32, %c0_i32_0 : i32, i32
  }
  func.func @transform_4(%arg0: i32) -> (i32, i32) {
    %c0_i32 = arith.constant 0 : i32
    %c0_i32_0 = arith.constant 0 : i32
    return %arg0, %c0_i32 : i32, i32
  }
  func.func @transform_5(%arg0: i32) -> (i32, i32) {
    %c0_i32 = arith.constant 0 : i32
    %c0_i32_0 = arith.constant 0 : i32
    return %arg0, %c0_i32 : i32, i32
  }
  func.func @transform_6(%arg0: i32) -> (i32, i32) {
    %c0_i32 = arith.constant 0 : i32
    %c0_i32_0 = arith.constant 0 : i32
    return %arg0, %c0_i32 : i32, i32
  }
  func.func @transform_7(%arg0: i32) -> (i32, i32) {
    %c0_i32 = arith.constant 0 : i32
    %c0_i32_0 = arith.constant 0 : i32
    return %arg0, %c0_i32 : i32, i32
  }
  func.func @transform_8(%arg0: i32) -> (i32, i32) {
    %c0_i32 = arith.constant 0 : i32
    %c0_i32_0 = arith.constant 0 : i32
    return %arg0, %c0_i32 : i32, i32
  }
}

</mosaic_0001>

<bundles_post_ra>
// kernel: _mlp_forward_impl.1
= control target key start
LH: loop header
LB: loop body
LE: loop exit
PB: predicated region body
PF: predicated region fallthrough
CT: control target
= control target key end

     0   :  { %14 = vsyncpa [#allocation3], 0  ;;  %s640_s0 = inlined_call_operand.vmem [shape: f32[32,128], index: 0, kind: input, shape index: {}]   ;;  %s641_s1 = inlined_call_operand.vmem [shape: f32[128,128], index: 1, kind: input, shape index: {}]   ;;  %s642_s2 = inlined_call_operand.hbm [shape: f32[128,128], index: 2, kind: input, shape index: {}]   ;;  %s643_s3 = inlined_call_operand.hbm [shape: f32[128,128], index: 3, kind: input, shape index: {}]   ;;  %s644_s4 = inlined_call_operand.hbm [shape: f32[32,128], index: 4, kind: output, shape index: {0}]   ;;  %s645_s5 = inlined_call_operand.hbm [shape: f32[32,128], index: 5, kind: output, shape index: {1}]   ;;  %s646_s6 = inlined_call_operand.hbm [shape: f32[32,128], index: 6, kind: output, shape index: {2}]   ;;  %s647_s7 = inlined_call_operand.hbm [shape: f32[32,128], index: 7, kind: output, shape index: {3}]   ;;  %s648_s8 = inlined_call_operand.vmem [shape: f32[32,128], index: 8, kind: output, shape index: {4}]  }
   0x1   :  { %15 = vsyncpa [#allocation6], 0 }
   0x2   :  { %16 = vsyncpa [#allocation4], 0 }
   0x3   :  { %17 = vsyncpa [#allocation9], 0 }
   0x4   :  { %18 = vsyncpa [#allocation12], 0  ;;  %s27_s29 = sshll.u32 %s642_s2, 4  ;;  %s479_s30 = smov [#allocation2]   ;;  %s28_s29 = int_to_ptr.hbm [resolvable:$true] %s27_s29 }
   0x5   :  { %s29_s9 = sshll.u32 %s479_s30, 4  ;;  %s40_s12 = sshll.u32 %s643_s3, 4  ;;  %s30_s9 = int_to_ptr.vmem [resolvable:$true] %s29_s9  ;;  %s41_s12 = int_to_ptr.hbm [resolvable:$true] %s40_s12 }
   0x6   :  { %s480_s13 = smov 128   ;;  %s481_s14 = smov 8  }
   0x7   :  { %35 = dma.hbm_to_vmem [thread:$0]  %s28_s29, 2048, %s30_s9, [#allocation3], %s480_s13, %s480_s13, %s481_s14  }
   0x8   :  { %s482_s15 = smov [#allocation5]  }
   0x9   :  { %s42_s16 = sshll.u32 %s482_s15, 4  ;;  %s43_s16 = int_to_ptr.vmem [resolvable:$true] %s42_s16 }
   0xa   :  { %48 = dma.hbm_to_vmem [thread:$0]  %s41_s12, 2048, %s43_s16, [#allocation6], %s480_s13, %s480_s13, %s481_s14  }
   0xb   :  { %469 = dma.done.wait [#allocation3], 2048  }
   0xc   :  { %470 = vsyncadd [#allocation3], 4294965248 }
   0xd   :  { %471 = dma.done.wait [#allocation6], 2048  }
   0xe   :  { %472 = vsyncadd [#allocation6], 4294965248  ;;  %v76_v0 = vld [vmem:[%s641_s1 + $0x78] sm:$0xff]  ;;  %v75_v1 = vld [vmem:[%s641_s1 + $0x70] sm:$0xff]  ;;  %s243_s15 = sshll.u32 %s645_s5, 4  ;;  %s230_s3 = sshll.u32 %s644_s4, 4  ;;  %s244_s15 = int_to_ptr.hbm [resolvable:$true] %s243_s15  ;;  %s231_s3 = int_to_ptr.hbm [resolvable:$true] %s230_s3 }
   0xf   :  { %77 = vmatpush.msra.mxu0 %v76_v0  ;;  %301 = vmatpush.msra.mxu3 %v76_v0  ;;  %v74_v2 = vld [vmem:[%s641_s1 + $0x68] sm:$0xff]  ;;  %v73_v3 = vld [vmem:[%s641_s1 + $0x60] sm:$0xff]  ;;  %v72_v4 = vld [vmem:[%s641_s1 + $0x58] sm:$0xff]  ;;  %s484_s17 = smov [#allocation7]   ;;  %s485_s19 = smov [#allocation10]  }
  0x10   :  { %v71_v5 = vld [vmem:[%s641_s1 + $0x50] sm:$0xff]  ;;  %v70_v6 = vld [vmem:[%s641_s1 + $0x48] sm:$0xff]  ;;  %v69_v7 = vld [vmem:[%s641_s1 + $0x40] sm:$0xff]  ;;  %s228_s18 = sshll.u32 %s484_s17, 4  ;;  %s254_s5 = sshll.u32 %s485_s19, 4  ;;  %s229_s18 = int_to_ptr.vmem [resolvable:$true] %s228_s18  ;;  %s255_s5 = int_to_ptr.vmem [resolvable:$true] %s254_s5 }
  0x11   :  { %78 = vmatpush.msra.mxu0 %v75_v1  ;;  %302 = vmatpush.msra.mxu3 %v75_v1  ;;  %v68_v8 = vld [vmem:[%s641_s1 + $0x38] sm:$0xff]  ;;  %v67_v9 = vld [vmem:[%s641_s1 + $0x30] sm:$0xff]  ;;  %v66_v12 = vld [vmem:[%s641_s1 + $0x28] sm:$0xff]  ;;  %s256_s22 = sshll.u32 %s646_s6, 4  ;;  %s269_s24 = sshll.u32 %s647_s7, 4  ;;  %s257_s22 = int_to_ptr.hbm [resolvable:$true] %s256_s22  ;;  %s270_s24 = int_to_ptr.hbm [resolvable:$true] %s269_s24 }
  0x12   :  { %v133_v10 = vld [vmem:[#allocation2 + $0x78] sm:$0xff]  ;;  %v132_v11 = vld [vmem:[#allocation2 + $0x70] sm:$0xff]  ;;  %v131_v13 = vld [vmem:[#allocation2 + $0x68] sm:$0xff]  ;;  %s486_s25 = smov [#allocation11]  }
  0x13   :  { %79 = vmatpush.msra.mxu0 %v74_v2  ;;  %303 = vmatpush.msra.mxu3 %v74_v2  ;;  %v65_v14 = vld [vmem:[%s641_s1 + $0x20] sm:$0xff]  ;;  %v64_v16 = vld [vmem:[%s641_s1 + $0x18] sm:$0xff]  ;;  %v63_v18 = vld [vmem:[%s641_s1 + $0x10] sm:$0xff]  ;;  %s267_s26 = sshll.u32 %s486_s25, 4  ;;  %s268_s26 = int_to_ptr.vmem [resolvable:$true] %s267_s26 }
  0x14   :  { %134 = vmatpush.msra.mxu1 %v133_v10  ;;  %v130_v15 = vld [vmem:[#allocation2 + $0x60] sm:$0xff]  ;;  %v129_v17 = vld [vmem:[#allocation2 + $0x58] sm:$0xff]  ;;  %v128_v19 = vld [vmem:[#allocation2 + $0x50] sm:$0xff] }
  0x15   :  { %80 = vmatpush.msra.mxu0 %v73_v3  ;;  %304 = vmatpush.msra.mxu3 %v73_v3  ;;  %v62_v20 = vld [vmem:[%s641_s1 + $0x8] sm:$0xff]  ;;  %v61_v22 = vld [vmem:[%s641_s1] sm:$0xff]  ;;  %v125_v26 = vld [vmem:[#allocation2 + $0x38] sm:$0xff] }
  0x16   :  { %135 = vmatpush.msra.mxu1 %v132_v11  ;;  %v127_v21 = vld [vmem:[#allocation2 + $0x48] sm:$0xff]  ;;  %v57_v23 = vld [vmem:[%s640_s0] sm:$0xff]  ;;  %v124_v27 = vld [vmem:[#allocation2 + $0x30] sm:$0xff] }
  0x17   :  { %81 = vmatpush.msra.mxu0 %v72_v4  ;;  %305 = vmatpush.msra.mxu3 %v72_v4  ;;  %v58_v24 = vld [vmem:[%s640_s0 + $0x8] sm:$0xff]  ;;  %v126_v25 = vld [vmem:[#allocation2 + $0x40] sm:$0xff]  ;;  %v59_v29 = vld [vmem:[%s640_s0 + $0x10] sm:$0xff] }
  0x18   :  { %136 = vmatpush.msra.mxu1 %v131_v13  ;;  %v123_v28 = vld [vmem:[#allocation2 + $0x28] sm:$0xff]  ;;  %v122_v30 = vld [vmem:[#allocation2 + $0x20] sm:$0xff]  ;;  %v121_v31 = vld [vmem:[#allocation2 + $0x18] sm:$0xff] }
  0x19   :  { %82 = vmatpush.msra.mxu0 %v71_v5  ;;  %306 = vmatpush.msra.mxu3 %v71_v5  ;;  %v120_v32 = vld [vmem:[#allocation2 + $0x10] sm:$0xff]  ;;  %v60_v33 = vld [vmem:[%s640_s0 + $0x18] sm:$0xff]  ;;  %v119_v34 = vld [vmem:[#allocation2 + $0x8] sm:$0xff]  ;;  %s483_s0 = smov [#allocation8]  }
  0x1a   :  { %137 = vmatpush.msra.mxu1 %v130_v15  ;;  %v118_v35 = vld [vmem:[#allocation2] sm:$0xff]  ;;  %v190_v36 = vld [vmem:[#allocation5 + $0x78] sm:$0xff]  ;;  %v189_v37 = vld [vmem:[#allocation5 + $0x70] sm:$0xff]  ;;  %s241_s10 = sshll.u32 %s483_s0, 4  ;;  %s242_s10 = int_to_ptr.vmem [resolvable:$true] %s241_s10 }
  0x1b   :  { %83 = vmatpush.msra.mxu0 %v70_v6  ;;  %307 = vmatpush.msra.mxu3 %v70_v6  ;;  %v188_v38 = vld [vmem:[#allocation5 + $0x68] sm:$0xff]  ;;  %v187_v39 = vld [vmem:[#allocation5 + $0x60] sm:$0xff]  ;;  %v186_v42 = vld [vmem:[#allocation5 + $0x58] sm:$0xff] }
  0x1c   :  { %138 = vmatpush.msra.mxu1 %v129_v17  ;;  %191 = vmatpush.msra.mxu2 %v190_v36  ;;  %v185_v43 = vld [vmem:[#allocation5 + $0x50] sm:$0xff]  ;;  %v184_v44 = vld [vmem:[#allocation5 + $0x48] sm:$0xff]  ;;  %v183_v47 = vld [vmem:[#allocation5 + $0x40] sm:$0xff] }
  0x1d   :  { %84 = vmatpush.msra.mxu0 %v69_v7  ;;  %308 = vmatpush.msra.mxu3 %v69_v7  ;;  %v182_v48 = vld [vmem:[#allocation5 + $0x38] sm:$0xff]  ;;  %v181_v49 = vld [vmem:[#allocation5 + $0x30] sm:$0xff]  ;;  %v180_v50 = vld [vmem:[#allocation5 + $0x28] sm:$0xff] }
  0x1e   :  { %139 = vmatpush.msra.mxu1 %v128_v19  ;;  %192 = vmatpush.msra.mxu2 %v189_v37  ;;  %v179_v53 = vld [vmem:[#allocation5 + $0x20] sm:$0xff]  ;;  %v178_v54 = vld [vmem:[#allocation5 + $0x18] sm:$0xff]  ;;  %v177_v55 = vld [vmem:[#allocation5 + $0x10] sm:$0xff] }
  0x1f   :  { %85 = vmatpush.msra.mxu0 %v68_v8  ;;  %309 = vmatpush.msra.mxu3 %v68_v8  ;;  %v176_v58 = vld [vmem:[#allocation5 + $0x8] sm:$0xff]  ;;  %v175_v59 = vld [vmem:[#allocation5] sm:$0xff] }
  0x20   :  { %140 = vmatpush.msra.mxu1 %v127_v21  ;;  %193 = vmatpush.msra.mxu2 %v188_v38 }
  0x21   :  { %86 = vmatpush.msra.mxu0 %v67_v9  ;;  %310 = vmatpush.msra.mxu3 %v67_v9 }
  0x22   :  { %141 = vmatpush.msra.mxu1 %v126_v25  ;;  %194 = vmatpush.msra.mxu2 %v187_v39 }
  0x23   :  { %87 = vmatpush.msra.mxu0 %v66_v12  ;;  %311 = vmatpush.msra.mxu3 %v66_v12 }
  0x24   :  { %142 = vmatpush.msra.mxu1 %v125_v26  ;;  %195 = vmatpush.msra.mxu2 %v186_v42 }
  0x25   :  { %88 = vmatpush.msra.mxu0 %v65_v14  ;;  %312 = vmatpush.msra.mxu3 %v65_v14 }
  0x26   :  { %143 = vmatpush.msra.mxu1 %v124_v27  ;;  %196 = vmatpush.msra.mxu2 %v185_v43 }
  0x27   :  { %89 = vmatpush.msra.mxu0 %v64_v16  ;;  %313 = vmatpush.msra.mxu3 %v64_v16 }
  0x28   :  { %144 = vmatpush.msra.mxu1 %v123_v28  ;;  %197 = vmatpush.msra.mxu2 %v184_v44 }
  0x29   :  { %90 = vmatpush.msra.mxu0 %v63_v18  ;;  %314 = vmatpush.msra.mxu3 %v63_v18 }
  0x2a   :  { %145 = vmatpush.msra.mxu1 %v122_v30  ;;  %198 = vmatpush.msra.mxu2 %v183_v47 }
  0x2b   :  { %91 = vmatpush.msra.mxu0 %v62_v20  ;;  %315 = vmatpush.msra.mxu3 %v62_v20 }
  0x2c   :  { %146 = vmatpush.msra.mxu1 %v121_v31  ;;  %199 = vmatpush.msra.mxu2 %v182_v48 }
  0x2d   :  { %92 = vmatpush.msra.mxu0 %v61_v22  ;;  %316 = vmatpush.msra.mxu3 %v61_v22 }
  0x2e   :  { %93 = vmatmul.f32.vlgmr.msra.gmra.mxu0 %v57_v23  ;;  %96 = vmatmul.f32.vlgmr.msra.gmra.mxu3 %v58_v24 }
  0x2f   :  { %147 = vmatpush.msra.mxu1 %v120_v32  ;;  %200 = vmatpush.msra.mxu2 %v181_v49 }
  0x31   :  { %148 = vmatpush.msra.mxu1 %v119_v34  ;;  %201 = vmatpush.msra.mxu2 %v180_v50 }
  0x33   :  { %149 = vmatpush.msra.mxu1 %v118_v35  ;;  %202 = vmatpush.msra.mxu2 %v179_v53 }
  0x35   :  { %203 = vmatpush.msra.mxu2 %v178_v54 }
  0x36   :  { %99 = vmatmul.f32.gmra.mxu3 %v59_v29 }
  0x37   :  { %204 = vmatpush.msra.mxu2 %v177_v55 }
  0x39   :  { %205 = vmatpush.msra.mxu2 %v176_v58 }
  0x3b   :  { %206 = vmatpush.msra.mxu2 %v175_v59 }
  0x3e   :  { %102 = vmatmul.f32.gmra.mxu3 %v60_v33 }
  0xab   :  { %v94_v40 = vpop.f32.mrf.mxu0 }
  0xac   :  { %106 = vst [vmem:[#allocation7] sm:$0xff] %v94_v40  ;;  %v110_v41 = vmax.f32 %v94_v40, 0.0 }
  0xae   :  { %114 = vst [vmem:[#allocation8] sm:$0xff] %v110_v41  ;;  %150 = vmatmul.f32.vlgmr.msra.gmra.mxu1 %v110_v41 }
  0xb1   :  { %v97_v45 = vpop.f32.mrf.mxu3 }
  0xb2   :  { %107 = vst [vmem:[#allocation7 + $0x8] sm:$0xff] %v97_v45  ;;  %v111_v46 = vmax.f32 %v97_v45, 0.0 }
  0xb4   :  { %115 = vst [vmem:[#allocation8 + $0x8] sm:$0xff] %v111_v46 }
  0xb6   :  { %153 = vmatmul.f32.gmra.mxu1 %v111_v46 }
  0xb9   :  { %v100_v51 = vpop.f32.mrf.mxu3 }
  0xba   :  { %108 = vst [vmem:[#allocation7 + $0x10] sm:$0xff] %v100_v51  ;;  %v112_v52 = vmax.f32 %v100_v51, 0.0 }
  0xbc   :  { %116 = vst [vmem:[#allocation8 + $0x10] sm:$0xff] %v112_v52 }
  0xbe   :  { %156 = vmatmul.f32.gmra.mxu1 %v112_v52 }
  0xc1   :  { %v103_v56 = vpop.f32.mrf.mxu3 }
  0xc2   :  { %109 = vst [vmem:[#allocation7 + $0x18] sm:$0xff] %v103_v56  ;;  %v113_v57 = vmax.f32 %v103_v56, 0.0 }
  0xc3   :  { %236 = dma.vmem_to_hbm [thread:$0]  %s229_s18, 512, %s231_s3, [#allocation4], %s480_s13, %s480_s13, %s481_s14  }
  0xc4   :  { %117 = vst [vmem:[#allocation8 + $0x18] sm:$0xff] %v113_v57 }
  0xc5   :  { %249 = dma.vmem_to_hbm [thread:$0]  %s242_s10, 512, %s244_s15, [#allocation9], %s480_s13, %s480_s13, %s481_s14  }
  0xc6   :  { %159 = vmatmul.f32.gmra.mxu1 %v113_v57 }
 0x12b   :  { %v151_v60 = vpop.f32.mrf.mxu1 }
 0x12c   :  { %163 = vst [vmem:[#allocation10] sm:$0xff] %v151_v60  ;;  %v167_v61 = vmax.f32 %v151_v60, 0.0 }
 0x12e   :  { %171 = vst [vmem:[#allocation11] sm:$0xff] %v167_v61  ;;  %207 = vmatmul.f32.vlgmr.msra.gmra.mxu2 %v167_v61 }
 0x133   :  { %v154_v62 = vpop.f32.mrf.mxu1 }
 0x134   :  { %164 = vst [vmem:[#allocation10 + $0x8] sm:$0xff] %v154_v62  ;;  %v168_v63 = vmax.f32 %v154_v62, 0.0 }
 0x136   :  { %172 = vst [vmem:[#allocation11 + $0x8] sm:$0xff] %v168_v63  ;;  %210 = vmatmul.f32.gmra.mxu2 %v168_v63 }
 0x13b   :  { %v157_v0 = vpop.f32.mrf.mxu1 }
 0x13c   :  { %165 = vst [vmem:[#allocation10 + $0x10] sm:$0xff] %v157_v0  ;;  %v169_v1 = vmax.f32 %v157_v0, 0.0 }
 0x13e   :  { %173 = vst [vmem:[#allocation11 + $0x10] sm:$0xff] %v169_v1  ;;  %213 = vmatmul.f32.gmra.mxu2 %v169_v1 }
 0x143   :  { %v160_v2 = vpop.f32.mrf.mxu1 }
 0x144   :  { %166 = vst [vmem:[#allocation10 + $0x18] sm:$0xff] %v160_v2  ;;  %v170_v3 = vmax.f32 %v160_v2, 0.0 }
 0x145   :  { %262 = dma.vmem_to_hbm [thread:$0]  %s255_s5, 512, %s257_s22, [#allocation9], %s480_s13, %s480_s13, %s481_s14  }
 0x146   :  { %174 = vst [vmem:[#allocation11 + $0x18] sm:$0xff] %v170_v3  ;;  %216 = vmatmul.f32.gmra.mxu2 %v170_v3 }
 0x147   :  { %275 = dma.vmem_to_hbm [thread:$0]  %s268_s26, 512, %s270_s24, [#allocation12], %s480_s13, %s480_s13, %s481_s14  }
 0x1b1   :  { %v208_v4 = vpop.f32.mrf.mxu2 }
 0x1b2   :  { %220 = vst [vmem:[%s648_s8] sm:$0xff] %v208_v4 }
 0x1b9   :  { %v211_v5 = vpop.f32.mrf.mxu2 }
 0x1ba   :  { %221 = vst [vmem:[%s648_s8 + $0x8] sm:$0xff] %v211_v5 }
 0x1c1   :  { %v214_v6 = vpop.f32.mrf.mxu2 }
 0x1c2   :  { %222 = vst [vmem:[%s648_s8 + $0x10] sm:$0xff] %v214_v6 }
 0x1c9   :  { %v217_v7 = vpop.f32.mrf.mxu2 }
 0x1ca   :  { %223 = vst [vmem:[%s648_s8 + $0x18] sm:$0xff] %v217_v7 }
 0x1cb   :  { %473 = dma.done.wait [#allocation4], 512  }
 0x1cc   :  { %474 = vsyncadd [#allocation4], 4294966784 }
 0x1cd   :  { %475 = dma.done.wait [#allocation9], 1024  }
 0x1ce   :  { %476 = vsyncadd [#allocation9], 4294966272 }
 0x1cf   :  { %477 = dma.done.wait [#allocation12], 512  }
 0x1d0   :  { %478 = vsyncadd [#allocation12], 4294966784 }
 0x1d1   :  { %296 = vsyncpa [#allocation3], 1 }
 0x1d2   :  { %297 = vsyncpa [#allocation6], 1 }
 0x1d3   :  { %298 = vsyncpa [#allocation4], 1 }
 0x1d4   :  { %299 = vsyncpa [#allocation9], 1 }
 0x1d5   :  { %300 = vsyncpa [#allocation12], 1 }

</bundles_post_ra>
